<compile_context>
chip_gen: v7x
topology: tpu7x:2x2x1
jax: 0.10.0
libtpu: 0.0.40
codegen_flags: <defaults>
</compile_context>

<pallas_src>
import functools

import jax
import jax.numpy as jnp
from jax.experimental import pallas as pl
from jax.experimental.pallas import tpu as pltpu


def _round_up(x, m):
    return (x + m - 1) // m * m


def _dueling_kernel(action_size, network_type, do_combine,
                    x_ref, w0_ref, b0_ref, w1_ref, b1_ref, wh_ref, bh_ref,
                    out_ref):
    # ---- base FC network: Linear -> ReLU, Linear -> ReLU ------------------
    # (the extra F.relu(...) in the PyTorch forward is idempotent after ReLU)
    h = jnp.dot(x_ref[...].astype(jnp.bfloat16), w0_ref[...],
                preferred_element_type=jnp.float32)
    h = jnp.maximum(h + b0_ref[...], 0.0)
    h = jnp.dot(h.astype(jnp.bfloat16), w1_ref[...],
                preferred_element_type=jnp.float32)
    h = jnp.maximum(h + b1_ref[...], 0.0)

    # ---- fused value+advantage head (single lane-dense matmul) ------------
    # columns [0:A] = advantage, column A = value, remaining columns = 0
    head = jnp.dot(h.astype(jnp.bfloat16), wh_ref[...],
                   preferred_element_type=jnp.float32) + bh_ref[...]

    if not do_combine:
        # multi-tile path: emit the raw head; the global reduction and the
        # dueling combine happen outside (tiles are fully independent).
        out_ref[...] = head
    else:
        # single grid step (TB == B): finish the dueling combine in-kernel.
        tb, p = head.shape
        cols = jax.lax.broadcasted_iota(jnp.int32, (tb, p), 1)
        adv_valid = cols < action_size
        if network_type == "mean":
            red = jnp.sum(jnp.where(adv_valid, head, 0.0)) * (
                1.0 / (tb * action_size))
        else:  # "max"
            red = jnp.max(jnp.where(adv_valid, head, -jnp.inf))
        v = head[:, action_size:action_size + 1]        # value column
        # Q-values land in cols [0:A]; value / padding columns keep head.
        out_ref[...] = jnp.where(adv_valid, head + (v - red), head)


def pack_params(params, action_size):
    """One-time parameter prep (hoisted out of the forward call):
    fuse the value/advantage heads, zero-pad hidden dims to lane-dense
    multiples of 128, cast matmul weights to bfloat16."""
    S, H1 = params["w0"].shape
    H2 = params["w1"].shape[1]
    A = action_size
    H1p = _round_up(H1, 128)
    H2p = _round_up(H2, 128)
    P = _round_up(A + 1, 128)

    w0p = jnp.zeros((S, H1p), jnp.float32).at[:, :H1].set(params["w0"])
    b0p = jnp.zeros((1, H1p), jnp.float32).at[:, :H1].set(params["b0"])
    w1p = jnp.zeros((H1p, H2p), jnp.float32).at[:H1, :H2].set(params["w1"])
    b1p = jnp.zeros((1, H2p), jnp.float32).at[:, :H2].set(params["b1"])
    whp = jnp.zeros((H2p, P), jnp.float32)
    whp = whp.at[:H2, :A].set(params["wa"]).at[:H2, A:A + 1].set(params["wv"])
    bhp = jnp.zeros((1, P), jnp.float32)
    bhp = bhp.at[:, :A].set(params["ba"]).at[:, A:A + 1].set(params["bv"])

    return dict(w0=w0p.astype(jnp.bfloat16), b0=b0p,
                w1=w1p.astype(jnp.bfloat16), b1=b1p,
                wh=whp.astype(jnp.bfloat16), bh=bhp)


def dueling_dqn_forward(x, packed, action_size, network_type="mean",
                        block_batch=512):
    """x: (B, state_size) f32.  packed: output of pack_params()."""
    if network_type not in ("mean", "max"):
        raise Exception("network type can be either 'mean' or 'max'")

    B, S = x.shape
    H1p = packed["w0"].shape[1]
    H2p = packed["w1"].shape[1]
    P = packed["wh"].shape[1]
    A = action_size

    # ---- batch tiling: single grid step whenever the batch fits -----------
    if B <= block_batch:
        TB, nbt = B, 1            # block == full dim -> no (8,128) constraint
    else:
        TB = block_batch          # multiple of 8; partial edge block allowed
        nbt = pl.cdiv(B, TB)
    do_combine = nbt == 1

    kernel = functools.partial(_dueling_kernel, A, network_type, do_combine)

    flops = 2 * B * (S * H1p + H1p * H2p + H2p * P)
    bytes_accessed = (4 * B * S
                      + 2 * (S * H1p + H1p * H2p + H2p * P)
                      + 4 * (H1p + H2p + P)
                      + 4 * B * P)

    head = pl.pallas_call(
        kernel,
        out_shape=jax.ShapeDtypeStruct((B, P), jnp.float32),
        grid_spec=pltpu.PrefetchScalarGridSpec(
            num_scalar_prefetch=0,
            grid=(nbt,),
            in_specs=[
                pl.BlockSpec((TB, S), lambda i: (i, 0)),     # x: batch-tiled
                pl.BlockSpec((S, H1p), lambda i: (0, 0)),    # weights resident
                pl.BlockSpec((1, H1p), lambda i: (0, 0)),
                pl.BlockSpec((H1p, H2p), lambda i: (0, 0)),
                pl.BlockSpec((1, H2p), lambda i: (0, 0)),
                pl.BlockSpec((H2p, P), lambda i: (0, 0)),
                pl.BlockSpec((1, P), lambda i: (0, 0)),
            ],
            out_specs=pl.BlockSpec((TB, P), lambda i: (i, 0)),  # per-tile out
        ),
        compiler_params=pltpu.CompilerParams(
            dimension_semantics=("parallel",),   # tiles are independent now
        ),
        cost_estimate=pl.CostEstimate(
            flops=flops, transcendentals=0, bytes_accessed=bytes_accessed),
    )(x, packed["w0"], packed["b0"], packed["w1"], packed["b1"],
      packed["wh"], packed["bh"])

    if do_combine:
        return head[:, :A]

    # multi-tile path: tiny global reduction + dueling combine in plain jnp.
    a = head[:, :A]
    v = head[:, A:A + 1]
    red = jnp.mean(a) if network_type == "mean" else jnp.max(a)
    return v + (a - red)


def init_params(key, state_size, fc_layer_sizes, action_size):
    """PyTorch-style init: U(-1/sqrt(fan_in), 1/sqrt(fan_in)).
    Weights stored as (in_features, out_features)."""
    sizes = [state_size, *fc_layer_sizes]
    keys = jax.random.split(key, 8)

    def lin(kw, kb, fin, fout):
        bound = 1.0 / jnp.sqrt(jnp.float32(fin))
        w = jax.random.uniform(kw, (fin, fout), jnp.float32, -bound, bound)
        b = jax.random.uniform(kb, (1, fout), jnp.float32, -bound, bound)
        return w, b

    w0, b0 = lin(keys[0], keys[1], sizes[0], sizes[1])
    w1, b1 = lin(keys[2], keys[3], sizes[1], sizes[2])
    wv, bv = lin(keys[4], keys[5], sizes[2], 1)
    wa, ba = lin(keys[6], keys[7], sizes[2], action_size)
    return dict(w0=w0, b0=b0, w1=w1, b1=b1, wv=wv, bv=bv, wa=wa, ba=ba)


def dueling_dqn_reference(x, p, network_type="mean", bf16_matmuls=False):
    """Pure-JAX reference: f32 (module-exact) or bf16-matmul recipe."""
    if bf16_matmuls:
        def mm(a, w):
            return jnp.dot(a.astype(jnp.bfloat16), w.astype(jnp.bfloat16),
                           preferred_element_type=jnp.float32)
    else:
        def mm(a, w):
            return jnp.dot(a, w, preferred_element_type=jnp.float32)
    h = jnp.maximum(mm(x, p["w0"]) + p["b0"], 0.0)
    h = jnp.maximum(mm(h, p["w1"]) + p["b1"], 0.0)   # extra F.relu idempotent
    v = mm(h, p["wv"]) + p["bv"]
    a = mm(h, p["wa"]) + p["ba"]
    red = jnp.mean(a) if network_type == "mean" else jnp.max(a)
    return v + (a - red)


if __name__ == "__main__":
    # Shapes consistent with the module: state_size=32, fc_layer_sizes=[64,32],
    # action_size=8.
    state_size = 32
    fc_layer_sizes = [64, 32]
    action_size = 8

    key = jax.random.PRNGKey(0)
    key_x, key_p = jax.random.split(key)
    params = init_params(key_p, state_size, fc_layer_sizes, action_size)
    packed = pack_params(params, action_size)   # one-time prep (hoisted)

    fwd = jax.jit(dueling_dqn_forward,
                  static_argnames=("action_size", "network_type",
                                   "block_batch"))

    # case 1: B=200, block_batch=512 -> single grid step, combine fused in-kernel
    # case 2: B=600, block_batch=256 -> 3 parallel tiles + partial edge block,
    #          combine done in the tiny jnp epilogue
    for batch, bb in ((200, 512), (600, 256)):
        x = jax.random.normal(key_x, (batch, state_size), jnp.float32)
        for nt in ("mean", "max"):
            out = jax.block_until_ready(
                fwd(x, packed, action_size=action_size, network_type=nt,
                    block_batch=bb))
            assert out.shape == (batch, action_size)
            ref_bf = dueling_dqn_reference(x, params, nt, bf16_matmuls=True)
            ref_f32 = dueling_dqn_reference(x, params, nt, bf16_matmuls=False)
            assert jnp.allclose(out, ref_bf, atol=2e-3, rtol=2e-3), \
                f"bf16-recipe mismatch ({nt}, B={batch})"
            assert jnp.allclose(out, ref_f32, atol=3e-2, rtol=0.0), \
                f"f32 drift too large ({nt}, B={batch})"

    print("KERNEL_OK")
</pallas_src>

<mosaic_0001>
module attributes {stable_mosaic.version = 11 : i64} {
  func.func @_dueling_kernel(%arg0: i32, %arg1: memref<200x32xf32, #tpu.memory_space<vmem>>, %arg2: memref<32x128xbf16, #tpu.memory_space<vmem>>, %arg3: memref<1x128xf32, #tpu.memory_space<vmem>>, %arg4: memref<128x128xbf16, #tpu.memory_space<vmem>>, %arg5: memref<1x128xf32, #tpu.memory_space<vmem>>, %arg6: memref<128x128xbf16, #tpu.memory_space<vmem>>, %arg7: memref<1x128xf32, #tpu.memory_space<vmem>>, %arg8: memref<200x128xf32, #tpu.memory_space<vmem>>) attributes {dimension_semantics = [#tpu.dimension_semantics<parallel>], iteration_bounds = array<i64: 1>, scalar_prefetch = 0 : i64, scratch_operands = 0 : i64, tpu.core_type = #tpu.core_type<tc>, window_params = [{transform_indices = @transform_0, window_bounds = array<i64: 200, 32>}, {pipeline_mode = #tpu.pipeline_mode<synchronous>, transform_indices = @transform_1, window_bounds = array<i64: 32, 128>}, {pipeline_mode = #tpu.pipeline_mode<synchronous>, transform_indices = @transform_2, window_bounds = array<i64: 1, 128>}, {pipeline_mode = #tpu.pipeline_mode<synchronous>, transform_indices = @transform_3, window_bounds = array<i64: 128, 128>}, {pipeline_mode = #tpu.pipeline_mode<synchronous>, transform_indices = @transform_4, window_bounds = array<i64: 1, 128>}, {pipeline_mode = #tpu.pipeline_mode<synchronous>, transform_indices = @transform_5, window_bounds = array<i64: 128, 128>}, {pipeline_mode = #tpu.pipeline_mode<synchronous>, transform_indices = @transform_6, window_bounds = array<i64: 1, 128>}, {transform_indices = @transform_7, window_bounds = array<i64: 200, 128>}]} {
    %c0 = arith.constant 0 : index
    %c0_0 = arith.constant 0 : index
    %0 = vector.load %arg1[%c0, %c0_0] : memref<200x32xf32, #tpu.memory_space<vmem>>, vector<200x32xf32>
    %1 = arith.truncf %0 : vector<200x32xf32> to vector<200x32xbf16>
    %c0_1 = arith.constant 0 : index
    %c0_2 = arith.constant 0 : index
    %2 = vector.load %arg2[%c0_1, %c0_2] : memref<32x128xbf16, #tpu.memory_space<vmem>>, vector<32x128xbf16>
    %cst = arith.constant dense<0.000000e+00> : vector<200x128xf32>
    %3 = tpu.matmul %1, %2, %cst {dimension_numbers = #tpu.dot_dimension_numbers<[1], [0], [0], [1], [0, 0, 1, 1], [], []>} : vector<200x32xbf16>, vector<32x128xbf16>, vector<200x128xf32> -> vector<200x128xf32>
    %c0_3 = arith.constant 0 : index
    %c0_4 = arith.constant 0 : index
    %4 = vector.load %arg3[%c0_3, %c0_4] : memref<1x128xf32, #tpu.memory_space<vmem>>, vector<1x128xf32>
    %5 = vector.broadcast %4 : vector<1x128xf32> to vector<200x128xf32>
    %6 = arith.addf %3, %5 : vector<200x128xf32>
    %cst_5 = arith.constant 0.000000e+00 : f32
    %7 = vector.broadcast %cst_5 : f32 to vector<200x128xf32>
    %8 = arith.maximumf %6, %7 : vector<200x128xf32>
    %9 = arith.truncf %8 : vector<200x128xf32> to vector<200x128xbf16>
    %c0_6 = arith.constant 0 : index
    %c0_7 = arith.constant 0 : index
    %10 = vector.load %arg4[%c0_6, %c0_7] : memref<128x128xbf16, #tpu.memory_space<vmem>>, vector<128x128xbf16>
    %cst_8 = arith.constant dense<0.000000e+00> : vector<200x128xf32>
    %11 = tpu.matmul %9, %10, %cst_8 {dimension_numbers = #tpu.dot_dimension_numbers<[1], [0], [0], [1], [0, 0, 1, 1], [], []>} : vector<200x128xbf16>, vector<128x128xbf16>, vector<200x128xf32> -> vector<200x128xf32>
    %c0_9 = arith.constant 0 : index
    %c0_10 = arith.constant 0 : index
    %12 = vector.load %arg5[%c0_9, %c0_10] : memref<1x128xf32, #tpu.memory_space<vmem>>, vector<1x128xf32>
    %13 = vector.broadcast %12 : vector<1x128xf32> to vector<200x128xf32>
    %14 = arith.addf %11, %13 : vector<200x128xf32>
    %cst_11 = arith.constant 0.000000e+00 : f32
    %15 = vector.broadcast %cst_11 : f32 to vector<200x128xf32>
    %16 = arith.maximumf %14, %15 : vector<200x128xf32>
    %17 = arith.truncf %16 : vector<200x128xf32> to vector<200x128xbf16>
    %c0_12 = arith.constant 0 : index
    %c0_13 = arith.constant 0 : index
    %18 = vector.load %arg6[%c0_12, %c0_13] : memref<128x128xbf16, #tpu.memory_space<vmem>>, vector<128x128xbf16>
    %cst_14 = arith.constant dense<0.000000e+00> : vector<200x128xf32>
    %19 = tpu.matmul %17, %18, %cst_14 {dimension_numbers = #tpu.dot_dimension_numbers<[1], [0], [0], [1], [0, 0, 1, 1], [], []>} : vector<200x128xbf16>, vector<128x128xbf16>, vector<200x128xf32> -> vector<200x128xf32>
    %c0_15 = arith.constant 0 : index
    %c0_16 = arith.constant 0 : index
    %20 = vector.load %arg7[%c0_15, %c0_16] : memref<1x128xf32, #tpu.memory_space<vmem>>, vector<1x128xf32>
    %21 = vector.broadcast %20 : vector<1x128xf32> to vector<200x128xf32>
    %22 = arith.addf %19, %21 : vector<200x128xf32>
    %23 = tpu.iota {dimensions = array<i32: 1>} : vector<200x128xi32>
    %c8_i32 = arith.constant 8 : i32
    %24 = vector.broadcast %c8_i32 : i32 to vector<200x128xi32>
    %25 = arith.cmpi slt, %23, %24 : vector<200x128xi32>
    %cst_17 = arith.constant 0.000000e+00 : f32
    %26 = vector.broadcast %cst_17 : f32 to vector<200x128xf32>
    %27 = arith.select %25, %22, %26 : vector<200x128xi1>, vector<200x128xf32>
    %28 = vector.shape_cast %27 : vector<200x128xf32> to vector<1x200x128xf32>
    %cst_18 = arith.constant dense<0.000000e+00> : vector<1xf32>
    %29 = vector.multi_reduction <add>, %28, %cst_18 [1, 2] : vector<1x200x128xf32> to vector<1xf32>
    %30 = vector.shape_cast %29 : vector<1xf32> to vector<1x1x1xf32>
    %31 = vector.extract %30[0, 0, 0] : f32 from vector<1x1x1xf32>
    %cst_19 = arith.constant 6.250000e-04 : f32
    %32 = arith.mulf %31, %cst_19 : f32
    %33 = vector.extract_strided_slice %22 {offsets = [0, 8], sizes = [200, 1], strides = [1, 1]} : vector<200x128xf32> to vector<200x1xf32>
    %34 = vector.broadcast %32 : f32 to vector<200x1xf32>
    %35 = arith.subf %33, %34 : vector<200x1xf32>
    %36 = vector.broadcast %35 : vector<200x1xf32> to vector<200x128xf32>
    %37 = arith.addf %22, %36 : vector<200x128xf32>
    %38 = arith.select %25, %37, %22 : vector<200x128xi1>, vector<200x128xf32>
    %c0_20 = arith.constant 0 : index
    %c0_21 = arith.constant 0 : index
    %39 = vector.load %arg8[%c0_20, %c0_21] : memref<200x128xf32, #tpu.memory_space<vmem>>, vector<200x128xf32>
    tpu.vector_store %arg8[%c0_20, %c0_21], %38 {strides = array<i32>} : memref<200x128xf32, #tpu.memory_space<vmem>>, vector<200x128xf32>,
    return
  }
  func.func @transform_0(%arg0: i32) -> (i32, i32) {
    %c0_i32 = arith.constant 0 : i32
    %c0_i32_0 = arith.constant 0 : i32
    return %arg0, %c0_i32 : i32, i32
  }
  func.func @transform_1(%arg0: i32) -> (i32, i32) {
    %c0_i32 = arith.constant 0 : i32
    %c0_i32_0 = arith.constant 0 : i32
    %c0_i32_1 = arith.constant 0 : i32
    return %c0_i32, %c0_i32_0 : i32, i32
  }
  func.func @transform_2(%arg0: i32) -> (i32, i32) {
    %c0_i32 = arith.constant 0 : i32
    %c0_i32_0 = arith.constant 0 : i32
    %c0_i32_1 = arith.constant 0 : i32
    return %c0_i32, %c0_i32_0 : i32, i32
  }
  func.func @transform_3(%arg0: i32) -> (i32, i32) {
    %c0_i32 = arith.constant 0 : i32
    %c0_i32_0 = arith.constant 0 : i32
    %c0_i32_1 = arith.constant 0 : i32
    return %c0_i32, %c0_i32_0 : i32, i32
  }
  func.func @transform_4(%arg0: i32) -> (i32, i32) {
    %c0_i32 = arith.constant 0 : i32
    %c0_i32_0 = arith.constant 0 : i32
    %c0_i32_1 = arith.constant 0 : i32
    return %c0_i32, %c0_i32_0 : i32, i32
  }
  func.func @transform_5(%arg0: i32) -> (i32, i32) {
    %c0_i32 = arith.constant 0 : i32
    %c0_i32_0 = arith.constant 0 : i32
    %c0_i32_1 = arith.constant 0 : i32
    return %c0_i32, %c0_i32_0 : i32, i32
  }
  func.func @transform_6(%arg0: i32) -> (i32, i32) {
    %c0_i32 = arith.constant 0 : i32
    %c0_i32_0 = arith.constant 0 : i32
    %c0_i32_1 = arith.constant 0 : i32
    return %c0_i32, %c0_i32_0 : i32, i32
  }
  func.func @transform_7(%arg0: i32) -> (i32, i32) {
    %c0_i32 = arith.constant 0 : i32
    %c0_i32_0 = arith.constant 0 : i32
    return %arg0, %c0_i32 : i32, i32
  }
}

</mosaic_0001>

<bundles_post_ra>
// kernel: dueling_dqn_forward.1
= control target key start
LH: loop header
LB: loop body
LE: loop exit
PB: predicated region body
PF: predicated region fallthrough
CT: control target
= control target key end

     0   :  { %v1358_v0 = vmov 0.0   ;;  %vm1359_vm0 = vmmov 0   ;;  %vm88_vm1 = vcmask 261120   ;;  %s2068_s1 = inlined_call_operand.vmem [shape: bf16[32,128], index: 1, kind: input, shape index: {}]   ;;  %s2069_s0 = inlined_call_operand.vmem [shape: f32[200,32], index: 0, kind: input, shape index: {}]   ;;  %s2070_s3 = inlined_call_operand.vmem [shape: bf16[128,128], index: 3, kind: input, shape index: {}]   ;;  %s2071_s5 = inlined_call_operand.vmem [shape: bf16[128,128], index: 5, kind: input, shape index: {}]   ;;  %s2072_s2 = inlined_call_operand.vmem [shape: f32[1,128], index: 2, kind: input, shape index: {}]   ;;  %s2073_s4 = inlined_call_operand.vmem [shape: f32[1,128], index: 4, kind: input, shape index: {}]   ;;  %s2074_s6 = inlined_call_operand.vmem [shape: f32[1,128], index: 6, kind: input, shape index: {}]   ;;  %s2075_s7 = inlined_call_operand.vmem [shape: f32[200,128], index: 7, kind: output, shape index: {}]  }
   0x1   :  { %1137 = vmatprep.subr.bf16.mxu0 %v1358_v0  ;;  %v1340_v1 = vld [vmem:[%s2068_s1] sm:$0xff]   ;;  %1141 = vmatprep.mubr.msk.bf16.mxu0 %vm1359_vm0, %v1358_v0  ;;  %v1341_v2 = vld [vmem:[%s2068_s1 + $0x8] sm:$0xff]   ;;  %v41_v6 = vld [vmem:[%s2069_s0 + $0x70] sm:$0xff] }
   0x2   :  { %1329 = vmatprep.subr.bf16.mxu1 %v1358_v0  ;;  %1169 = vmatprep.mubr.msk.bf16.mxu1 %vm1359_vm0, %v1358_v0  ;;  %v27_v3 = vld [vmem:[%s2069_s0] sm:$0xff]  ;;  %v28_v4 = vld [vmem:[%s2069_s0 + $0x8] sm:$0xff]  ;;  %v42_v7 = vld [vmem:[%s2069_s0 + $0x78] sm:$0xff] }
   0x3   :  { %1138 = vmatpush3.bf16.msra.mxu0 %v1340_v1  ;;  %1331 = vmatpush3.bf16.msra.mxu1 %v1340_v1  ;;  %v52_v5 = vpack.c.bf16 %v28_v4, %v27_v3  ;;  %v59_v8 = vpack.c.bf16 %v42_v7, %v41_v6  ;;  %v29_v9 = vld [vmem:[%s2069_s0 + $0x10] sm:$0xff]  ;;  %v30_v10 = vld [vmem:[%s2069_s0 + $0x18] sm:$0xff]  ;;  %v43_v11 = vld [vmem:[%s2069_s0 + $0x80] sm:$0xff] }
   0x4   :  { %1139 = vmatprep.subr.bf16.mxu0 %v1358_v0  ;;  %1330 = vmatprep.subr.bf16.mxu1 %v1358_v0  ;;  %v44_v12 = vld [vmem:[%s2069_s0 + $0x88] sm:$0xff]  ;;  %v1342_v13 = vld [vmem:[%s2070_s3] sm:$0xff]   ;;  %v53_v14 = vpack.c.bf16 %v30_v10, %v29_v9  ;;  %v1344_v17 = vld [vmem:[%s2070_s3 + $0x10] sm:$0xff]  }
   0x5   :  { %v1343_v15 = vld [vmem:[%s2070_s3 + $0x8] sm:$0xff]   ;;  %v60_v16 = vpack.c.bf16 %v44_v12, %v43_v11  ;;  %v31_v18 = vld [vmem:[%s2069_s0 + $0x20] sm:$0xff]  ;;  %v45_v20 = vld [vmem:[%s2069_s0 + $0x90] sm:$0xff] }
   0x6   :  { %v32_v19 = vld [vmem:[%s2069_s0 + $0x28] sm:$0xff]  ;;  %v46_v21 = vld [vmem:[%s2069_s0 + $0x98] sm:$0xff]  ;;  %v1346_v25 = vld [vmem:[%s2070_s3 + $0x20] sm:$0xff]  }
   0x7   :  { %1140 = vmatpush3.bf16.msra.mxu0 %v1341_v2  ;;  %1332 = vmatpush3.bf16.msra.mxu1 %v1341_v2  ;;  %v54_v22 = vpack.c.bf16 %v32_v19, %v31_v18  ;;  %v1345_v23 = vld [vmem:[%s2070_s3 + $0x18] sm:$0xff]   ;;  %v61_v24 = vpack.c.bf16 %v46_v21, %v45_v20  ;;  %v33_v26 = vld [vmem:[%s2069_s0 + $0x30] sm:$0xff]  ;;  %v47_v28 = vld [vmem:[%s2069_s0 + $0xa0] sm:$0xff] }
   0x8   :  { %1193 = vmatprep.subr.bf16.mxu1 %v1358_v0  ;;  %1261 = vmatprep.subr.bf16.mxu0 %v1358_v0  ;;  %v34_v27 = vld [vmem:[%s2069_s0 + $0x38] sm:$0xff]  ;;  %v48_v29 = vld [vmem:[%s2069_s0 + $0xa8] sm:$0xff]  ;;  %v1348_v33 = vld [vmem:[%s2070_s3 + $0x30] sm:$0xff]  }
   0x9   :  { %v55_v30 = vpack.c.bf16 %v34_v27, %v33_v26  ;;  %v1347_v31 = vld [vmem:[%s2070_s3 + $0x28] sm:$0xff]   ;;  %v62_v32 = vpack.c.bf16 %v48_v29, %v47_v28  ;;  %v35_v34 = vld [vmem:[%s2069_s0 + $0x40] sm:$0xff]  ;;  %v49_v36 = vld [vmem:[%s2069_s0 + $0xb0] sm:$0xff] }
   0xa   :  { %1142 = vmatmul.mubr.msk.bf16.vlgmr.msra.gmra.mrb[0].mxu0 %vm88_vm1, %v52_v5  ;;  %1170 = vmatmul.mubr.msk.bf16.vlgmr.msra.gmra.mrb[0].mxu1 %vm88_vm1, %v59_v8  ;;  %v36_v35 = vld [vmem:[%s2069_s0 + $0x48] sm:$0xff]  ;;  %v50_v37 = vld [vmem:[%s2069_s0 + $0xb8] sm:$0xff]  ;;  %v37_v40 = vld [vmem:[%s2069_s0 + $0x50] sm:$0xff] }
   0xb   :  { %1145 = vmatprep.mubr.msk.bf16.mxu0 %vm1359_vm0, %v1358_v0  ;;  %1173 = vmatprep.mubr.msk.bf16.mxu1 %vm1359_vm0, %v1358_v0  ;;  %v56_v38 = vpack.c.bf16 %v36_v35, %v35_v34  ;;  %v63_v39 = vpack.c.bf16 %v50_v37, %v49_v36  ;;  %v38_v41 = vld [vmem:[%s2069_s0 + $0x58] sm:$0xff]  ;;  %v51_v42 = vld [vmem:[%s2069_s0 + $0xc0] sm:$0xff]  ;;  %v40_v46 = vld [vmem:[%s2069_s0 + $0x68] sm:$0xff] }
   0xc   :  { %1194 = vmatpush3.bf16.msra.mxu1 %v1342_v13  ;;  %v57_v43 = vpack.c.bf16 %v38_v41, %v37_v40  ;;  %v64_v44 = vpack.c.bf16 %v51_v42, %v51_v42  ;;  %v39_v45 = vld [vmem:[%s2069_s0 + $0x60] sm:$0xff]  ;;  %v1349_v48 = vld [vmem:[%s2070_s3 + $0x38] sm:$0xff]   ;;  %v1351_v50 = vld [vmem:[%s2071_s5 + $0x8] sm:$0xff]  }
   0xd   :  { %1195 = vmatprep.subr.bf16.mxu1 %v1358_v0  ;;  %v58_v47 = vpack.c.bf16 %v40_v46, %v39_v45  ;;  %v1350_v49 = vld [vmem:[%s2071_s5] sm:$0xff]   ;;  %v1352_v51 = vld [vmem:[%s2071_s5 + $0x10] sm:$0xff]   ;;  %v1353_v52 = vld [vmem:[%s2071_s5 + $0x18] sm:$0xff]  }
   0xe   :  { %1262 = vmatpush3.bf16.msra.mxu0 %v1350_v49  ;;  %v1354_v53 = vld [vmem:[%s2071_s5 + $0x20] sm:$0xff]   ;;  %v1355_v54 = vld [vmem:[%s2071_s5 + $0x28] sm:$0xff]   ;;  %v1356_v57 = vld [vmem:[%s2071_s5 + $0x30] sm:$0xff]  }
   0xf   :  { %1263 = vmatprep.subr.bf16.mxu0 %v1358_v0  ;;  %v1588_v55 = vld [vmem:[%s2072_s2] ss:$0 sm:$0xff] }
  0x10   :  { %1196 = vmatpush3.bf16.msra.mxu1 %v1343_v15 }
  0x11   :  { %1197 = vmatprep.subr.bf16.mxu1 %v1358_v0 }
  0x12   :  { %1146 = vmatmul.mubr.msk.bf16.gmra.mrb[4].mxu0 %vm88_vm1, %v53_v14  ;;  %1174 = vmatmul.mubr.msk.bf16.gmra.mrb[4].mxu1 %vm88_vm1, %v60_v16 }
  0x13   :  { %1149 = vmatprep.mubr.msk.bf16.mxu0 %vm1359_vm0, %v1358_v0  ;;  %1177 = vmatprep.mubr.msk.bf16.mxu1 %vm1359_vm0, %v1358_v0 }
  0x14   :  { %1198 = vmatpush3.bf16.msra.mxu1 %v1344_v17  ;;  %1264 = vmatpush3.bf16.msra.mxu0 %v1351_v50 }
  0x15   :  { %1199 = vmatprep.subr.bf16.mxu1 %v1358_v0  ;;  %1265 = vmatprep.subr.bf16.mxu0 %v1358_v0 }
  0x18   :  { %1200 = vmatpush3.bf16.msra.mxu1 %v1345_v23  ;;  %1266 = vmatpush3.bf16.msra.mxu0 %v1352_v51 }
  0x19   :  { %1201 = vmatprep.subr.bf16.mxu1 %v1358_v0  ;;  %1267 = vmatprep.subr.bf16.mxu0 %v1358_v0 }
  0x1a   :  { %1150 = vmatmul.mubr.msk.bf16.gmra.mrb[8].mxu0 %vm88_vm1, %v54_v22  ;;  %1178 = vmatmul.mubr.msk.bf16.gmra.mrb[8].mxu1 %vm88_vm1, %v61_v24 }
  0x1b   :  { %1153 = vmatprep.mubr.msk.bf16.mxu0 %vm1359_vm0, %v1358_v0  ;;  %1181 = vmatprep.mubr.msk.bf16.mxu1 %vm1359_vm0, %v1358_v0 }
  0x1c   :  { %1202 = vmatpush3.bf16.msra.mxu1 %v1346_v25  ;;  %1268 = vmatpush3.bf16.msra.mxu0 %v1353_v52 }
  0x1d   :  { %1203 = vmatprep.subr.bf16.mxu1 %v1358_v0  ;;  %1269 = vmatprep.subr.bf16.mxu0 %v1358_v0 }
  0x20   :  { %1204 = vmatpush3.bf16.msra.mxu1 %v1347_v31  ;;  %1270 = vmatpush3.bf16.msra.mxu0 %v1354_v53 }
  0x21   :  { %1205 = vmatprep.subr.bf16.mxu1 %v1358_v0  ;;  %1271 = vmatprep.subr.bf16.mxu0 %v1358_v0 }
  0x22   :  { %1154 = vmatmul.mubr.msk.bf16.gmra.mrb[12].mxu0 %vm88_vm1, %v55_v30  ;;  %1182 = vmatmul.mubr.msk.bf16.gmra.mrb[12].mxu1 %vm88_vm1, %v62_v32 }
  0x23   :  { %1157 = vmatprep.mubr.msk.bf16.mxu0 %vm1359_vm0, %v1358_v0  ;;  %1185 = vmatprep.mubr.msk.bf16.mxu1 %vm1359_vm0, %v1358_v0 }
  0x24   :  { %1206 = vmatpush3.bf16.msra.mxu1 %v1348_v33  ;;  %1272 = vmatpush3.bf16.msra.mxu0 %v1355_v54 }
  0x25   :  { %1207 = vmatprep.subr.bf16.mxu1 %v1358_v0  ;;  %1273 = vmatprep.subr.bf16.mxu0 %v1358_v0 }
  0x28   :  { %1208 = vmatpush3.bf16.msra.mxu1 %v1349_v48  ;;  %1274 = vmatpush3.bf16.msra.mxu0 %v1356_v57 }
  0x29   :  { %1275 = vmatprep.subr.bf16.mxu0 %v1358_v0 }
  0x2a   :  { %1158 = vmatmul.mubr.msk.bf16.gmra.mrb[16].mxu0 %vm88_vm1, %v56_v38  ;;  %1186 = vmatmul.mubr.msk.bf16.gmra.mrb[16].mxu1 %vm88_vm1, %v63_v39 }
  0x2b   :  { %1161 = vmatprep.mubr.msk.bf16.mxu0 %vm1359_vm0, %v1358_v0  ;;  %1189 = vmatprep.mubr.msk.bf16.mxu1 %vm1359_vm0, %v1358_v0 }
  0x32   :  { %1162 = vmatmul.mubr.msk.bf16.gmra.mrb[20].mxu0 %vm88_vm1, %v57_v43  ;;  %1190 = vmatmul.mubr.msk.bf16.gmra.mrb[20].mxu1 %vm88_vm1, %v64_v44 }
  0x33   :  { %1165 = vmatprep.mubr.msk.bf16.mxu0 %vm1359_vm0, %v1358_v0  ;;  %1209 = vmatprep.mubr.msk.bf16.mxu1 %vm1359_vm0, %v1358_v0 }
  0x3a   :  { %1166 = vmatmul.mubr.msk.bf16.gmra.mrb[24].mxu0 %vm88_vm1, %v58_v47 }
  0x3b   :  { %1277 = vmatprep.mubr.msk.bf16.mxu0 %vm1359_vm0, %v1358_v0 }
  0xdd   :  { %v162_v56 = vpop.f32.mrb[0].mxu0  ;;  %v218_v60 = vpop.f32.mrb[0].mxu1 }
  0xde   :  { %v163_v58 = vadd.f32 %v1588_v55, %v162_v56  ;;  %v1143_v59 = vpop.f32.mrb[1].mxu0  ;;  %v219_v62 = vadd.f32 %v1588_v55, %v218_v60  ;;  %v1171_v63 = vpop.f32.mrb[1].mxu1 }
  0xdf   :  { %v165_v61 = vpop.f32.mrb[2].mxu0  ;;  %v221_v3 = vpop.f32.mrb[2].mxu1 }
  0xe0   :  { %v166_v1 = vadd.f32 %v1588_v55, %v165_v61  ;;  %v1144_v2 = vpop.f32.mrb[3].mxu0  ;;  %v278_v4 = vmax.f32 %v219_v62, 0.0  ;;  %v222_v5 = vadd.f32 %v1588_v55, %v221_v3  ;;  %v1172_v6 = vpop.f32.mrb[3].mxu1  ;;  %v264_v7 = vmax.f32 %v163_v58, 0.0 }
  0xe2   :  { %v265_v8 = vmax.f32 %v166_v1, 0.0  ;;  %v279_v9 = vmax.f32 %v222_v5, 0.0 }
  0xe4   :  { %v289_v10 = vpack.c.bf16 %v265_v8, %v264_v7  ;;  %v1599_v12 = vpack.c.bf16 %v279_v9, %v278_v4 }
  0xe5   :  { %v170_v11 = vpop.f32.mrb[4].mxu0  ;;  %v226_v15 = vpop.f32.mrb[4].mxu1 }
  0xe6   :  { %v171_v13 = vadd.f32 %v1588_v55, %v170_v11  ;;  %v1147_v14 = vpop.f32.mrb[5].mxu0  ;;  %1210 = vmatmul.mubr.bf16.vlgmr.msra.gmra.mrb[24].mxu1 %v289_v10  ;;  %v227_v17 = vadd.f32 %v1588_v55, %v226_v15  ;;  %v1175_v18 = vpop.f32.mrb[5].mxu1 }
  0xe7   :  { %v173_v16 = vpop.f32.mrb[6].mxu0  ;;  %1213 = vmatprep.mubr.msk.bf16.mxu1 %vm1359_vm0, %v1358_v0  ;;  %v229_v21 = vpop.f32.mrb[6].mxu1 }
  0xe8   :  { %v174_v19 = vadd.f32 %v1588_v55, %v173_v16  ;;  %v1148_v20 = vpop.f32.mrb[7].mxu0  ;;  %v280_v22 = vmax.f32 %v227_v17, 0.0  ;;  %v230_v23 = vadd.f32 %v1588_v55, %v229_v21  ;;  %v1176_v24 = vpop.f32.mrb[7].mxu1  ;;  %v266_v25 = vmax.f32 %v171_v13, 0.0 }
  0xea   :  { %v267_v26 = vmax.f32 %v174_v19, 0.0  ;;  %v281_v27 = vmax.f32 %v230_v23, 0.0 }
  0xec   :  { %v290_v28 = vpack.c.bf16 %v267_v26, %v266_v25  ;;  %v1607_v30 = vpack.c.bf16 %v281_v27, %v280_v22 }
  0xed   :  { %v178_v29 = vpop.f32.mrb[8].mxu0  ;;  %v234_v33 = vpop.f32.mrb[8].mxu1 }
  0xee   :  { %v179_v31 = vadd.f32 %v1588_v55, %v178_v29  ;;  %v1151_v32 = vpop.f32.mrb[9].mxu0  ;;  %1214 = vmatmul.mubr.bf16.gmra.mrb[28].mxu1 %v290_v28  ;;  %v235_v35 = vadd.f32 %v1588_v55, %v234_v33  ;;  %v1179_v36 = vpop.f32.mrb[9].mxu1 }
  0xef   :  { %v181_v34 = vpop.f32.mrb[10].mxu0  ;;  %1217 = vmatprep.mubr.msk.bf16.mxu1 %vm1359_vm0, %v1358_v0  ;;  %v237_v39 = vpop.f32.mrb[10].mxu1 }
  0xf0   :  { %v182_v37 = vadd.f32 %v1588_v55, %v181_v34  ;;  %v1152_v38 = vpop.f32.mrb[11].mxu0  ;;  %v282_v40 = vmax.f32 %v235_v35, 0.0  ;;  %v238_v41 = vadd.f32 %v1588_v55, %v237_v39  ;;  %v1180_v42 = vpop.f32.mrb[11].mxu1  ;;  %v268_v43 = vmax.f32 %v179_v31, 0.0 }
  0xf2   :  { %v269_v44 = vmax.f32 %v182_v37, 0.0  ;;  %v283_v45 = vmax.f32 %v238_v41, 0.0 }
  0xf4   :  { %v291_v46 = vpack.c.bf16 %v269_v44, %v268_v43  ;;  %v1615_v48 = vpack.c.bf16 %v283_v45, %v282_v40 }
  0xf5   :  { %v186_v47 = vpop.f32.mrb[12].mxu0  ;;  %v242_v51 = vpop.f32.mrb[12].mxu1 }
  0xf6   :  { %v187_v49 = vadd.f32 %v1588_v55, %v186_v47  ;;  %v1155_v50 = vpop.f32.mrb[13].mxu0  ;;  %1218 = vmatmul.mubr.bf16.gmra.mrb[32].mxu1 %v291_v46  ;;  %v243_v53 = vadd.f32 %v1588_v55, %v242_v51  ;;  %v1183_v54 = vpop.f32.mrb[13].mxu1  ;;  %v1659_v47 = vld [vmem:[%s2073_s4] ss:$0 sm:$0xff] }
  0xf7   :  { %v189_v52 = vpop.f32.mrb[14].mxu0  ;;  %1221 = vmatprep.mubr.msk.bf16.mxu1 %vm1359_vm0, %v1358_v0  ;;  %v245_v58 = vpop.f32.mrb[14].mxu1 }
  0xf8   :  { %v190_v56 = vadd.f32 %v1588_v55, %v189_v52  ;;  %v1156_v57 = vpop.f32.mrb[15].mxu0  ;;  %v284_v59 = vmax.f32 %v243_v53, 0.0  ;;  %v246_v60 = vadd.f32 %v1588_v55, %v245_v58  ;;  %v1184_v61 = vpop.f32.mrb[15].mxu1  ;;  %v270_v62 = vmax.f32 %v187_v49, 0.0 }
  0xfa   :  { %v271_v63 = vmax.f32 %v190_v56, 0.0  ;;  %v285_v1 = vmax.f32 %v246_v60, 0.0 }
  0xfc   :  { %v292_v2 = vpack.c.bf16 %v271_v63, %v270_v62  ;;  %v299_v4 = vpack.c.bf16 %v285_v1, %v284_v59 }
  0xfd   :  { %v194_v3 = vpop.f32.mrb[16].mxu0  ;;  %v250_v7 = vpop.f32.mrb[16].mxu1 }
  0xfe   :  { %v195_v5 = vadd.f32 %v1588_v55, %v194_v3  ;;  %v1159_v6 = vpop.f32.mrb[17].mxu0  ;;  %1222 = vmatmul.mubr.bf16.gmra.mrb[36].mxu1 %v292_v2  ;;  %v251_v9 = vadd.f32 %v1588_v55, %v250_v7  ;;  %v1187_v10 = vpop.f32.mrb[17].mxu1 }
  0xff   :  { %v197_v8 = vpop.f32.mrb[18].mxu0  ;;  %1225 = vmatprep.mubr.msk.bf16.mxu1 %vm1359_vm0, %v1358_v0  ;;  %v253_v14 = vpop.f32.mrb[18].mxu1 }
 0x100   :  { %v198_v11 = vadd.f32 %v1588_v55, %v197_v8  ;;  %v1160_v13 = vpop.f32.mrb[19].mxu0  ;;  %v286_v15 = vmax.f32 %v251_v9, 0.0  ;;  %v254_v16 = vadd.f32 %v1588_v55, %v253_v14  ;;  %v1188_v17 = vpop.f32.mrb[19].mxu1  ;;  %v272_v18 = vmax.f32 %v195_v5, 0.0 }
 0x102   :  { %v273_v19 = vmax.f32 %v198_v11, 0.0  ;;  %v287_v20 = vmax.f32 %v254_v16, 0.0 }
 0x104   :  { %v293_v21 = vpack.c.bf16 %v273_v19, %v272_v18  ;;  %v300_v23 = vpack.c.bf16 %v287_v20, %v286_v15 }
 0x105   :  { %v202_v22 = vpop.f32.mrb[20].mxu0  ;;  %v258_v26 = vpop.f32.mrb[20].mxu1 }
 0x106   :  { %v203_v24 = vadd.f32 %v1588_v55, %v202_v22  ;;  %v1163_v25 = vpop.f32.mrb[21].mxu0  ;;  %1226 = vmatmul.mubr.bf16.gmra.mrb[40].mxu1 %v293_v21  ;;  %v259_v28 = vadd.f32 %v1588_v55, %v258_v26  ;;  %v1191_v29 = vpop.f32.mrb[21].mxu1 }
 0x107   :  { %v205_v27 = vpop.f32.mrb[22].mxu0  ;;  %1229 = vmatprep.mubr.msk.bf16.mxu1 %vm1359_vm0, %v1358_v0  ;;  %v261_v33 = vpop.f32.mrb[22].mxu1 }
 0x108   :  { %v206_v31 = vadd.f32 %v1588_v55, %v205_v27  ;;  %v1164_v32 = vpop.f32.mrb[23].mxu0  ;;  %v1192_v34 = vpop.f32.mrb[23].mxu1  ;;  %v274_v35 = vmax.f32 %v203_v24, 0.0 }
 0x10a   :  { %v275_v36 = vmax.f32 %v206_v31, 0.0 }
 0x10c   :  { %v294_v37 = vpack.c.bf16 %v275_v36, %v274_v35 }
 0x10d   :  { %v210_v38 = vpop.f32.mrb[24].mxu0 }
 0x10e   :  { %v211_v39 = vadd.f32 %v1588_v55, %v210_v38  ;;  %v1167_v40 = vpop.f32.mrb[25].mxu0  ;;  %1230 = vmatmul.mubr.bf16.gmra.mrb[44].mxu1 %v294_v37 }
 0x10f   :  { %v213_v41 = vpop.f32.mrb[26].mxu0  ;;  %1233 = vmatprep.mubr.msk.bf16.mxu1 %vm1359_vm0, %v1358_v0 }
 0x110   :  { %v214_v42 = vadd.f32 %v1588_v55, %v213_v41  ;;  %v1168_v43 = vpop.f32.mrb[27].mxu0  ;;  %v276_v44 = vmax.f32 %v211_v39, 0.0  ;;  %v1357_v55 = vld [vmem:[%s2071_s5 + $0x38] sm:$0xff]  }
 0x111   :  { %1276 = vmatpush3.bf16.msra.mxu0 %v1357_v55 }
 0x112   :  { %v277_v45 = vmax.f32 %v214_v42, 0.0 }
 0x114   :  { %v295_v46 = vpack.c.bf16 %v277_v45, %v276_v44 }
 0x116   :  { %1234 = vmatmul.mubr.bf16.gmra.mrb[48].mxu1 %v295_v46 }
 0x117   :  { %1237 = vmatprep.mubr.msk.bf16.mxu1 %vm1359_vm0, %v1358_v0 }
 0x11e   :  { %1238 = vmatmul.mubr.bf16.gmra.mrb[52].mxu1 %v1599_v12  ;;  %v288_v12 = vmax.f32 %v259_v28, 0.0 }
 0x11f   :  { %1241 = vmatprep.mubr.msk.bf16.mxu1 %vm1359_vm0, %v1358_v0 }
 0x126   :  { %1242 = vmatmul.mubr.bf16.gmra.mrb[56].mxu1 %v1607_v30  ;;  %v301_v30 = vpack.c.bf16 %v288_v12, %v288_v12 }
 0x127   :  { %1245 = vmatprep.mubr.msk.bf16.mxu1 %vm1359_vm0, %v1358_v0 }
 0x12e   :  { %1246 = vmatmul.mubr.bf16.gmra.mrb[60].mxu1 %v1615_v48 }
 0x12f   :  { %1249 = vmatprep.mubr.msk.bf16.mxu1 %vm1359_vm0, %v1358_v0 }
 0x136   :  { %1250 = vmatmul.mubr.bf16.gmra.mrb[64].mxu1 %v299_v4 }
 0x137   :  { %1253 = vmatprep.mubr.msk.bf16.mxu1 %vm1359_vm0, %v1358_v0 }
 0x13e   :  { %1254 = vmatmul.mubr.bf16.gmra.mrb[68].mxu1 %v300_v23 }
 0x13f   :  { %1257 = vmatprep.mubr.msk.bf16.mxu1 %vm1359_vm0, %v1358_v0 }
 0x146   :  { %1258 = vmatmul.mubr.bf16.gmra.mrb[72].mxu1 %v301_v30 }
 0x1b9   :  { %v407_v48 = vpop.f32.mrb[24].mxu1 }
 0x1ba   :  { %v408_v49 = vadd.f32 %v1659_v47, %v407_v48  ;;  %v1211_v50 = vpop.f32.mrb[25].mxu1 }
 0x1bb   :  { %v410_v51 = vpop.f32.mrb[26].mxu1 }
 0x1bc   :  { %v411_v52 = vadd.f32 %v1659_v47, %v410_v51  ;;  %v1212_v53 = vpop.f32.mrb[27].mxu1  ;;  %v509_v54 = vmax.f32 %v408_v49, 0.0 }
 0x1be   :  { %v510_v56 = vmax.f32 %v411_v52, 0.0 }
 0x1c0   :  { %v534_v57 = vpack.c.bf16 %v510_v56, %v509_v54 }
 0x1c1   :  { %v415_v58 = vpop.f32.mrb[28].mxu1 }
 0x1c2   :  { %v416_v59 = vadd.f32 %v1659_v47, %v415_v58  ;;  %v1215_v60 = vpop.f32.mrb[29].mxu1  ;;  %1278 = vmatmul.mubr.bf16.vlgmr.msra.gmra.mrb[28].mxu0 %v534_v57 }
 0x1c3   :  { %v418_v61 = vpop.f32.mrb[30].mxu1  ;;  %1281 = vmatprep.mubr.msk.bf16.mxu0 %vm1359_vm0, %v1358_v0 }
 0x1c4   :  { %v419_v62 = vadd.f32 %v1659_v47, %v418_v61  ;;  %v1216_v63 = vpop.f32.mrb[31].mxu1  ;;  %v511_v1 = vmax.f32 %v416_v59, 0.0 }
 0x1c6   :  { %v512_v2 = vmax.f32 %v419_v62, 0.0 }
 0x1c8   :  { %v535_v3 = vpack.c.bf16 %v512_v2, %v511_v1 }
 0x1c9   :  { %v423_v4 = vpop.f32.mrb[32].mxu1 }
 0x1ca   :  { %v424_v5 = vadd.f32 %v1659_v47, %v423_v4  ;;  %v1219_v6 = vpop.f32.mrb[33].mxu1  ;;  %1282 = vmatmul.mubr.bf16.gmra.mrb[32].mxu0 %v535_v3 }
 0x1cb   :  { %v426_v7 = vpop.f32.mrb[34].mxu1  ;;  %1285 = vmatprep.mubr.msk.bf16.mxu0 %vm1359_vm0, %v1358_v0 }
 0x1cc   :  { %v427_v8 = vadd.f32 %v1659_v47, %v426_v7  ;;  %v1220_v9 = vpop.f32.mrb[35].mxu1  ;;  %v513_v10 = vmax.f32 %v424_v5, 0.0 }
 0x1ce   :  { %v514_v11 = vmax.f32 %v427_v8, 0.0 }
 0x1d0   :  { %v536_v13 = vpack.c.bf16 %v514_v11, %v513_v10 }
 0x1d1   :  { %v431_v14 = vpop.f32.mrb[36].mxu1 }
 0x1d2   :  { %v432_v15 = vadd.f32 %v1659_v47, %v431_v14  ;;  %v1223_v16 = vpop.f32.mrb[37].mxu1  ;;  %1286 = vmatmul.mubr.bf16.gmra.mrb[36].mxu0 %v536_v13 }
 0x1d3   :  { %v434_v17 = vpop.f32.mrb[38].mxu1  ;;  %1289 = vmatprep.mubr.msk.bf16.mxu0 %vm1359_vm0, %v1358_v0 }
 0x1d4   :  { %v435_v18 = vadd.f32 %v1659_v47, %v434_v17  ;;  %v1224_v19 = vpop.f32.mrb[39].mxu1  ;;  %v515_v20 = vmax.f32 %v432_v15, 0.0 }
 0x1d6   :  { %v516_v21 = vmax.f32 %v435_v18, 0.0 }
 0x1d8   :  { %v537_v22 = vpack.c.bf16 %v516_v21, %v515_v20 }
 0x1d9   :  { %v439_v23 = vpop.f32.mrb[40].mxu1 }
 0x1da   :  { %v440_v24 = vadd.f32 %v1659_v47, %v439_v23  ;;  %v1227_v25 = vpop.f32.mrb[41].mxu1  ;;  %1290 = vmatmul.mubr.bf16.gmra.mrb[40].mxu0 %v537_v22 }
 0x1db   :  { %v442_v26 = vpop.f32.mrb[42].mxu1  ;;  %1293 = vmatprep.mubr.msk.bf16.mxu0 %vm1359_vm0, %v1358_v0 }
 0x1dc   :  { %v443_v27 = vadd.f32 %v1659_v47, %v442_v26  ;;  %v1228_v28 = vpop.f32.mrb[43].mxu1  ;;  %v517_v29 = vmax.f32 %v440_v24, 0.0 }
 0x1de   :  { %v518_v31 = vmax.f32 %v443_v27, 0.0 }
 0x1e0   :  { %v538_v32 = vpack.c.bf16 %v518_v31, %v517_v29 }
 0x1e1   :  { %v447_v33 = vpop.f32.mrb[44].mxu1 }
 0x1e2   :  { %v448_v34 = vadd.f32 %v1659_v47, %v447_v33  ;;  %v1231_v35 = vpop.f32.mrb[45].mxu1  ;;  %1294 = vmatmul.mubr.bf16.gmra.mrb[44].mxu0 %v538_v32 }
 0x1e3   :  { %v450_v36 = vpop.f32.mrb[46].mxu1  ;;  %1297 = vmatprep.mubr.msk.bf16.mxu0 %vm1359_vm0, %v1358_v0 }
 0x1e4   :  { %v451_v37 = vadd.f32 %v1659_v47, %v450_v36  ;;  %v1232_v38 = vpop.f32.mrb[47].mxu1  ;;  %v519_v39 = vmax.f32 %v448_v34, 0.0 }
 0x1e6   :  { %v520_v40 = vmax.f32 %v451_v37, 0.0 }
 0x1e8   :  { %v539_v41 = vpack.c.bf16 %v520_v40, %v519_v39 }
 0x1e9   :  { %v455_v42 = vpop.f32.mrb[48].mxu1 }
 0x1ea   :  { %v456_v43 = vadd.f32 %v1659_v47, %v455_v42  ;;  %v1235_v44 = vpop.f32.mrb[49].mxu1  ;;  %1298 = vmatmul.mubr.bf16.gmra.mrb[48].mxu0 %v539_v41 }
 0x1eb   :  { %v458_v45 = vpop.f32.mrb[50].mxu1  ;;  %1301 = vmatprep.mubr.msk.bf16.mxu0 %vm1359_vm0, %v1358_v0 }
 0x1ec   :  { %v459_v46 = vadd.f32 %v1659_v47, %v458_v45  ;;  %v1236_v55 = vpop.f32.mrb[51].mxu1  ;;  %v521_v12 = vmax.f32 %v456_v43, 0.0 }
 0x1ee   :  { %v522_v30 = vmax.f32 %v459_v46, 0.0 }
 0x1f0   :  { %v540_v48 = vpack.c.bf16 %v522_v30, %v521_v12 }
 0x1f1   :  { %v463_v49 = vpop.f32.mrb[52].mxu1 }
 0x1f2   :  { %v464_v50 = vadd.f32 %v1659_v47, %v463_v49  ;;  %v1239_v51 = vpop.f32.mrb[53].mxu1  ;;  %1302 = vmatmul.mubr.bf16.gmra.mrb[52].mxu0 %v540_v48 }
 0x1f3   :  { %v466_v52 = vpop.f32.mrb[54].mxu1  ;;  %1305 = vmatprep.mubr.msk.bf16.mxu0 %vm1359_vm0, %v1358_v0 }
 0x1f4   :  { %v467_v53 = vadd.f32 %v1659_v47, %v466_v52  ;;  %v1240_v54 = vpop.f32.mrb[55].mxu1  ;;  %v523_v56 = vmax.f32 %v464_v50, 0.0  ;;  %v754_v50 = vlaneseq }
 0x1f6   :  { %v524_v57 = vmax.f32 %v467_v53, 0.0  ;;  %v1715_v51 = vand.u32 127, %v754_v50 }
 0x1f8   :  { %v541_v58 = vpack.c.bf16 %v524_v57, %v523_v56  ;;  %vm756_vm2 = vcmp.lt.s32.totalorder %v1715_v51, 8 }
 0x1f9   :  { %v471_v59 = vpop.f32.mrb[56].mxu1 }
 0x1fa   :  { %v472_v60 = vadd.f32 %v1659_v47, %v471_v59  ;;  %v1243_v61 = vpop.f32.mrb[57].mxu1  ;;  %1306 = vmatmul.mubr.bf16.gmra.mrb[56].mxu0 %v541_v58 }
 0x1fb   :  { %v474_v62 = vpop.f32.mrb[58].mxu1  ;;  %1309 = vmatprep.mubr.msk.bf16.mxu0 %vm1359_vm0, %v1358_v0 }
 0x1fc   :  { %v475_v63 = vadd.f32 %v1659_v47, %v474_v62  ;;  %v1244_v1 = vpop.f32.mrb[59].mxu1  ;;  %v525_v2 = vmax.f32 %v472_v60, 0.0 }
 0x1fe   :  { %v526_v3 = vmax.f32 %v475_v63, 0.0 }
 0x200   :  { %v542_v4 = vpack.c.bf16 %v526_v3, %v525_v2 }
 0x201   :  { %v479_v5 = vpop.f32.mrb[60].mxu1 }
 0x202   :  { %v480_v6 = vadd.f32 %v1659_v47, %v479_v5  ;;  %v1247_v7 = vpop.f32.mrb[61].mxu1  ;;  %1310 = vmatmul.mubr.bf16.gmra.mrb[60].mxu0 %v542_v4 }
 0x203   :  { %v482_v8 = vpop.f32.mrb[62].mxu1  ;;  %1313 = vmatprep.mubr.msk.bf16.mxu0 %vm1359_vm0, %v1358_v0 }
 0x204   :  { %v483_v9 = vadd.f32 %v1659_v47, %v482_v8  ;;  %v1248_v10 = vpop.f32.mrb[63].mxu1  ;;  %v527_v11 = vmax.f32 %v480_v6, 0.0 }
 0x206   :  { %v528_v13 = vmax.f32 %v483_v9, 0.0 }
 0x208   :  { %v543_v14 = vpack.c.bf16 %v528_v13, %v527_v11 }
 0x209   :  { %v487_v15 = vpop.f32.mrb[64].mxu1 }
 0x20a   :  { %v488_v16 = vadd.f32 %v1659_v47, %v487_v15  ;;  %v1251_v17 = vpop.f32.mrb[65].mxu1  ;;  %1314 = vmatmul.mubr.bf16.gmra.mrb[64].mxu0 %v543_v14 }
 0x20b   :  { %v490_v18 = vpop.f32.mrb[66].mxu1  ;;  %1317 = vmatprep.mubr.msk.bf16.mxu0 %vm1359_vm0, %v1358_v0 }
 0x20c   :  { %v491_v19 = vadd.f32 %v1659_v47, %v490_v18  ;;  %v1252_v20 = vpop.f32.mrb[67].mxu1  ;;  %v529_v21 = vmax.f32 %v488_v16, 0.0 }
 0x20e   :  { %v530_v22 = vmax.f32 %v491_v19, 0.0 }
 0x210   :  { %v544_v23 = vpack.c.bf16 %v530_v22, %v529_v21 }
 0x211   :  { %v495_v24 = vpop.f32.mrb[68].mxu1 }
 0x212   :  { %v496_v25 = vadd.f32 %v1659_v47, %v495_v24  ;;  %v1255_v26 = vpop.f32.mrb[69].mxu1  ;;  %1318 = vmatmul.mubr.bf16.gmra.mrb[68].mxu0 %v544_v23 }
 0x213   :  { %v498_v27 = vpop.f32.mrb[70].mxu1  ;;  %1321 = vmatprep.mubr.msk.bf16.mxu0 %vm1359_vm0, %v1358_v0 }
 0x214   :  { %v499_v28 = vadd.f32 %v1659_v47, %v498_v27  ;;  %v1256_v29 = vpop.f32.mrb[71].mxu1  ;;  %v531_v31 = vmax.f32 %v496_v25, 0.0 }
 0x216   :  { %v532_v32 = vmax.f32 %v499_v28, 0.0 }
 0x218   :  { %v545_v33 = vpack.c.bf16 %v532_v32, %v531_v31 }
 0x219   :  { %v503_v34 = vpop.f32.mrb[72].mxu1 }
 0x21a   :  { %v504_v35 = vadd.f32 %v1659_v47, %v503_v34  ;;  %v1259_v36 = vpop.f32.mrb[73].mxu1  ;;  %1322 = vmatmul.mubr.bf16.gmra.mrb[72].mxu0 %v545_v33 }
 0x21b   :  { %v506_v37 = vpop.f32.mrb[74].mxu1  ;;  %1325 = vmatprep.mubr.msk.bf16.mxu0 %vm1359_vm0, %v1358_v0  ;;  %v1713_v0 = vld [vmem:[%s2074_s6] ss:$0 sm:$0xff] }
 0x21c   :  { %v533_v38 = vmax.f32 %v504_v35, 0.0  ;;  %v1260_v39 = vpop.f32.mrb[75].mxu1 }
 0x21e   :  { %v546_v40 = vpack.c.bf16 %v533_v38, %v533_v38 }
 0x222   :  { %1326 = vmatmul.mubr.bf16.gmra.mrb[76].mxu0 %v546_v40 }
 0x295   :  { %v652_v41 = vpop.f32.mrb[28].mxu0 }
 0x296   :  { %v1279_v42 = vpop.f32.mrb[29].mxu0  ;;  %v1721_v57 = vadd.f32 %v1713_v0, %v652_v41 }
 0x297   :  { %v655_v43 = vpop.f32.mrb[30].mxu0 }
 0x298   :  { %v1280_v44 = vpop.f32.mrb[31].mxu0  ;;  %v1718_v53 = vadd.f32 %v1713_v0, %v655_v43  ;;  %v757_v61 = vsel %vm756_vm2, %v1721_v57, 0.0 }
 0x29a   :  { %v758_v60 = vsel %vm756_vm2, %v1718_v53, 0.0 }
 0x29b   :  { %v782_v1 = vadd.f32 %v758_v60, %v757_v61 }
 0x29d   :  { %v660_v45 = vpop.f32.mrb[32].mxu0 }
 0x29e   :  { %v1283_v46 = vpop.f32.mrb[33].mxu0  ;;  %v1724_v58 = vadd.f32 %v1713_v0, %v660_v45 }
 0x29f   :  { %v663_v55 = vpop.f32.mrb[34].mxu0 }
 0x2a0   :  { %v1284_v12 = vpop.f32.mrb[35].mxu0  ;;  %v759_v62 = vsel %vm756_vm2, %v1724_v58, 0.0  ;;  %v1737_v63 = vadd.f32 %v1713_v0, %v663_v55 }
 0x2a1   :  { %v783_v5 = vadd.f32 %v782_v1, %v759_v62 }
 0x2a2   :  { %v760_v7 = vsel %vm756_vm2, %v1737_v63, 0.0 }
 0x2a3   :  { %v784_v11 = vadd.f32 %v783_v5, %v760_v7 }
 0x2a5   :  { %v668_v30 = vpop.f32.mrb[36].mxu0 }
 0x2a6   :  { %v1287_v47 = vpop.f32.mrb[37].mxu0  ;;  %v1740_v3 = vadd.f32 %v1713_v0, %v668_v30 }
 0x2a7   :  { %v671_v48 = vpop.f32.mrb[38].mxu0 }
 0x2a8   :  { %v1288_v49 = vpop.f32.mrb[39].mxu0  ;;  %v761_v9 = vsel %vm756_vm2, %v1740_v3, 0.0  ;;  %v1749_v10 = vadd.f32 %v1713_v0, %v671_v48 }
 0x2a9   :  { %v785_v14 = vadd.f32 %v784_v11, %v761_v9 }
 0x2aa   :  { %v762_v16 = vsel %vm756_vm2, %v1749_v10, 0.0 }
 0x2ab   :  { %v786_v22 = vadd.f32 %v785_v14, %v762_v16 }
 0x2ad   :  { %v676_v52 = vpop.f32.mrb[40].mxu0 }
 0x2ae   :  { %v1291_v54 = vpop.f32.mrb[41].mxu0  ;;  %v1752_v13 = vadd.f32 %v1713_v0, %v676_v52 }
 0x2af   :  { %v679_v56 = vpop.f32.mrb[42].mxu0 }
 0x2b0   :  { %v1292_v59 = vpop.f32.mrb[43].mxu0  ;;  %v763_v19 = vsel %vm756_vm2, %v1752_v13, 0.0  ;;  %v1761_v20 = vadd.f32 %v1713_v0, %v679_v56 }
 0x2b1   :  { %v787_v24 = vadd.f32 %v786_v22, %v763_v19 }
 0x2b2   :  { %v764_v25 = vsel %vm756_vm2, %v1761_v20, 0.0 }
 0x2b3   :  { %v788_v31 = vadd.f32 %v787_v24, %v764_v25 }
 0x2b5   :  { %v684_v2 = vpop.f32.mrb[44].mxu0 }
 0x2b6   :  { %v1295_v4 = vpop.f32.mrb[45].mxu0  ;;  %v1764_v23 = vadd.f32 %v1713_v0, %v684_v2 }
 0x2b7   :  { %v687_v6 = vpop.f32.mrb[46].mxu0 }
 0x2b8   :  { %v1296_v8 = vpop.f32.mrb[47].mxu0  ;;  %v765_v27 = vsel %vm756_vm2, %v1764_v23, 0.0  ;;  %v1773_v28 = vadd.f32 %v1713_v0, %v687_v6 }
 0x2b9   :  { %v789_v35 = vadd.f32 %v788_v31, %v765_v27 }
 0x2ba   :  { %v766_v36 = vsel %vm756_vm2, %v1773_v28, 0.0 }
 0x2bb   :  { %v790_v39 = vadd.f32 %v789_v35, %v766_v36 }
 0x2bd   :  { %v692_v15 = vpop.f32.mrb[48].mxu0 }
 0x2be   :  { %v1299_v17 = vpop.f32.mrb[49].mxu0  ;;  %v1776_v33 = vadd.f32 %v1713_v0, %v692_v15 }
 0x2bf   :  { %v695_v18 = vpop.f32.mrb[50].mxu0 }
 0x2c0   :  { %v1300_v21 = vpop.f32.mrb[51].mxu0  ;;  %v767_v37 = vsel %vm756_vm2, %v1776_v33, 0.0  ;;  %v1785_v38 = vadd.f32 %v1713_v0, %v695_v18 }
 0x2c1   :  { %v791_v43 = vadd.f32 %v790_v39, %v767_v37 }
 0x2c2   :  { %v768_v45 = vsel %vm756_vm2, %v1785_v38, 0.0 }
 0x2c3   :  { %v792_v30 = vadd.f32 %v791_v43, %v768_v45 }
 0x2c5   :  { %v700_v26 = vpop.f32.mrb[52].mxu0 }
 0x2c6   :  { %v1303_v29 = vpop.f32.mrb[53].mxu0  ;;  %v1788_v41 = vadd.f32 %v1713_v0, %v700_v26 }
 0x2c7   :  { %v703_v32 = vpop.f32.mrb[54].mxu0 }
 0x2c8   :  { %v1304_v34 = vpop.f32.mrb[55].mxu0  ;;  %v769_v55 = vsel %vm756_vm2, %v1788_v41, 0.0  ;;  %v1797_v12 = vadd.f32 %v1713_v0, %v703_v32 }
 0x2c9   :  { %v793_v48 = vadd.f32 %v792_v30, %v769_v55 }
 0x2ca   :  { %v770_v50 = vsel %vm756_vm2, %v1797_v12, 0.0 }
 0x2cb   :  { %v794_v61 = vadd.f32 %v793_v48, %v770_v50 }
 0x2cd   :  { %v708_v40 = vpop.f32.mrb[56].mxu0 }
 0x2ce   :  { %v1307_v42 = vpop.f32.mrb[57].mxu0  ;;  %v1800_v47 = vadd.f32 %v1713_v0, %v708_v40 }
 0x2cf   :  { %v711_v44 = vpop.f32.mrb[58].mxu0 }
 0x2d0   :  { %v1308_v46 = vpop.f32.mrb[59].mxu0  ;;  %v771_v56 = vsel %vm756_vm2, %v1800_v47, 0.0  ;;  %v1809_v59 = vadd.f32 %v1713_v0, %v711_v44 }
 0x2d1   :  { %v795_v1 = vadd.f32 %v794_v61, %v771_v56 }
 0x2d2   :  { %v772_v2 = vsel %vm756_vm2, %v1809_v59, 0.0 }
 0x2d3   :  { %v796_v8 = vadd.f32 %v795_v1, %v772_v2  ;;  %v1360_v1 = vmov 8  }
 0x2d4   :  { %1339 = vset.pattern.permute.xlu1 %v1360_v1  ;;  %1338 = vset.pattern.permute.xlu0 %v1360_v1 }
 0x2d5   :  { %v716_v49 = vpop.f32.mrb[60].mxu0 }
 0x2d6   :  { %v1311_v52 = vpop.f32.mrb[61].mxu0  ;;  %v1812_v62 = vadd.f32 %v1713_v0, %v716_v49 }
 0x2d7   :  { %v719_v54 = vpop.f32.mrb[62].mxu0 }
 0x2d8   :  { %v1312_v60 = vpop.f32.mrb[63].mxu0  ;;  %v773_v5 = vsel %vm756_vm2, %v1812_v62, 0.0  ;;  %v1821_v6 = vadd.f32 %v1713_v0, %v719_v54 }
 0x2d9   :  { %v797_v15 = vadd.f32 %v796_v8, %v773_v5 }
 0x2da   :  { %v774_v16 = vsel %vm756_vm2, %v1821_v6, 0.0 }
 0x2db   :  { %v798_v19 = vadd.f32 %v797_v15, %v774_v16 }
 0x2dd   :  { %v724_v4 = vpop.f32.mrb[64].mxu0 }
 0x2de   :  { %v1315_v7 = vpop.f32.mrb[65].mxu0  ;;  %v1824_v11 = vadd.f32 %v1713_v0, %v724_v4 }
 0x2df   :  { %v727_v9 = vpop.f32.mrb[66].mxu0 }
 0x2e0   :  { %v1316_v14 = vpop.f32.mrb[67].mxu0  ;;  %v775_v17 = vsel %vm756_vm2, %v1824_v11, 0.0  ;;  %v1833_v18 = vadd.f32 %v1713_v0, %v727_v9 }
 0x2e1   :  { %v799_v25 = vadd.f32 %v798_v19, %v775_v17 }
 0x2e2   :  { %v776_v27 = vsel %vm756_vm2, %v1833_v18, 0.0 }
 0x2e3   :  { %v800_v34 = vadd.f32 %v799_v25, %v776_v27 }
 0x2e5   :  { %v732_v21 = vpop.f32.mrb[68].mxu0 }
 0x2e6   :  { %v1836_v22 = vadd.f32 %v1713_v0, %v732_v21  ;;  %v1319_v24 = vpop.f32.mrb[69].mxu0 }
 0x2e7   :  { %v735_v26 = vpop.f32.mrb[70].mxu0 }
 0x2e8   :  { %v1320_v29 = vpop.f32.mrb[71].mxu0  ;;  %v777_v31 = vsel %vm756_vm2, %v1836_v22, 0.0  ;;  %v1845_v32 = vadd.f32 %v1713_v0, %v735_v26 }
 0x2e9   :  { %v801_v36 = vadd.f32 %v800_v34, %v777_v31 }
 0x2ea   :  { %v778_v40 = vsel %vm756_vm2, %v1845_v32, 0.0 }
 0x2eb   :  { %v802_v46 = vadd.f32 %v801_v36, %v778_v40 }
 0x2ed   :  { %v740_v35 = vpop.f32.mrb[72].mxu0 }
 0x2ee   :  { %v1848_v37 = vadd.f32 %v1713_v0, %v740_v35  ;;  %v1323_v39 = vpop.f32.mrb[73].mxu0 }
 0x2ef   :  { %v743_v42 = vpop.f32.mrb[74].mxu0 }
 0x2f0   :  { %v1854_v43 = vadd.f32 %v1713_v0, %v743_v42  ;;  %v1324_v44 = vpop.f32.mrb[75].mxu0  ;;  %v779_v45 = vsel %vm756_vm2, %v1848_v37, 0.0 }
 0x2f1   :  { %v803_v55 = vadd.f32 %v802_v46, %v779_v45 }
 0x2f2   :  { %v780_v30 = vsel %vm756_vm2, %v1854_v43, 0.0 }
 0x2f3   :  { %v804_v54 = vadd.f32 %v803_v55, %v780_v30 }
 0x2f5   :  { %v748_v48 = vpop.f32.mrb[76].mxu0 }
 0x2f6   :  { %v1863_v49 = vadd.f32 %v1713_v0, %v748_v48  ;;  %v1327_v50 = vpop.f32.mrb[77].mxu0 }
 0x2f7   :  { %v751_v52 = vpop.f32.mrb[78].mxu0 }
 0x2f8   :  { %v1328_v56 = vpop.f32.mrb[79].mxu0  ;;  %v781_v60 = vsel %vm756_vm2, %v1863_v49, 0.0 }
 0x2f9   :  { %v805_v61 = vadd.f32 %v804_v54, %v781_v60 }
 0x2fb   :  { %806 = vadd.xlane.f32.xlu0 %v805_v61 }
 0x388   :  { %v807_v2 = vpop.xlane.xlu0 %806 }
 0x389   :  { %v808_v4 = vrot.slane %v807_v2, 4 }
 0x38b   :  { %v809_v5 = vadd.f32 %v808_v4, %v807_v2 }
 0x38d   :  { %v810_v7 = vrot.slane %v809_v5, 2 }
 0x38f   :  { %v811_v8 = vadd.f32 %v810_v7, %v809_v5 }
 0x391   :  { %v812_v0 = vrot.slane %v811_v8, 1 }
 0x393   :  { %v813_v9 = vadd.f32 %v812_v0, %v811_v8 }
 0x395   :  { %1333 = vpush %v813_v9 }
 0x3c6   :  { %s1334_s6 = spop %1333 }
 0x3c7   :  { %s815_s15 = smul.f32 0.000625, %s1334_s6 }
 0x3c9   :  { %v816_v14 = vstv %s815_s15 }
 0x3ca   :  { %v818_v15 = vsub.f32 %v1718_v53, %v816_v14  ;;  %v817_v16 = vsub.f32 %v1721_v57, %v816_v14  ;;  %v819_v17 = vsub.f32 %v1724_v58, %v816_v14  ;;  %v830_v19 = vsub.f32 %v1797_v12, %v816_v14 }
 0x3cb   :  { %v820_v21 = vsub.f32 %v1737_v63, %v816_v14  ;;  %v832_v24 = vsub.f32 %v1809_v59, %v816_v14  ;;  %v821_v25 = vsub.f32 %v1740_v3, %v816_v14  ;;  %v834_v26 = vsub.f32 %v1821_v6, %v816_v14 }
 0x3cc   :  { %849 = vperm.xlu1 %1339, %v818_v15   ;;  %844 = vperm.xlu0 %1338, %v817_v16   ;;  %v822_v27 = vsub.f32 %v1749_v10, %v816_v14  ;;  %v836_v29 = vsub.f32 %v1833_v18, %v816_v14  ;;  %v823_v31 = vsub.f32 %v1752_v13, %v816_v14 }
 0x3cd   :  { %v838_v34 = vsub.f32 %v1845_v32, %v816_v14  ;;  %v824_v35 = vsub.f32 %v1761_v20, %v816_v14  ;;  %v840_v36 = vsub.f32 %v1854_v43, %v816_v14  ;;  %v825_v39 = vsub.f32 %v1764_v23, %v816_v14 }
 0x3ce   :  { %v826_v40 = vsub.f32 %v1773_v28, %v816_v14  ;;  %v827_v42 = vsub.f32 %v1776_v33, %v816_v14  ;;  %v828_v44 = vsub.f32 %v1785_v38, %v816_v14  ;;  %v829_v45 = vsub.f32 %v1788_v41, %v816_v14 }
 0x3cf   :  { %v831_v46 = vsub.f32 %v1800_v47, %v816_v14  ;;  %v833_v55 = vsub.f32 %v1812_v62, %v816_v14  ;;  %v835_v30 = vsub.f32 %v1824_v11, %v816_v14  ;;  %v837_v48 = vsub.f32 %v1836_v22, %v816_v14 }
 0x3d0   :  { %854 = vperm.xlu1 %1339, %v819_v17   ;;  %909 = vperm.xlu0 %1338, %v830_v19   ;;  %v839_v50 = vsub.f32 %v1848_v37, %v816_v14  ;;  %v841_v52 = vsub.f32 %v1863_v49, %v816_v14 }
 0x3d4   :  { %859 = vperm.xlu1 %1339, %v820_v21   ;;  %919 = vperm.xlu0 %1338, %v832_v24  }
 0x3d8   :  { %864 = vperm.xlu1 %1339, %v821_v25   ;;  %929 = vperm.xlu0 %1338, %v834_v26  }
 0x3dc   :  { %869 = vperm.xlu1 %1339, %v822_v27   ;;  %939 = vperm.xlu0 %1338, %v836_v29  }
 0x3e0   :  { %874 = vperm.xlu1 %1339, %v823_v31   ;;  %949 = vperm.xlu0 %1338, %v838_v34  }
 0x3e4   :  { %879 = vperm.xlu1 %1339, %v824_v35   ;;  %959 = vperm.xlu0 %1338, %v840_v36  }
 0x3e8   :  { %884 = vperm.xlu1 %1339, %v825_v39  }
 0x3ec   :  { %889 = vperm.xlu1 %1339, %v826_v40  }
 0x3f0   :  { %894 = vperm.xlu1 %1339, %v827_v42  }
 0x3f4   :  { %899 = vperm.xlu1 %1339, %v828_v44  }
 0x3f8   :  { %904 = vperm.xlu1 %1339, %v829_v45  }
 0x3fc   :  { %914 = vperm.xlu1 %1339, %v831_v46  }
 0x400   :  { %924 = vperm.xlu1 %1339, %v833_v55  }
 0x404   :  { %934 = vperm.xlu1 %1339, %v835_v30  }
 0x408   :  { %944 = vperm.xlu1 %1339, %v837_v48  }
 0x40c   :  { %954 = vperm.xlu1 %1339, %v839_v50  }
 0x410   :  { %964 = vperm.xlu1 %1339, %v841_v52  }
 0x44b   :  { %v850_v54 = vpop.permute.xlu1 %849  ;;  %v845_v56 = vpop.permute.xlu0 %844 }
 0x44c   :  { %v968_v60 = vadd.f32 %v850_v54, %v1718_v53  ;;  %v967_v61 = vadd.f32 %v845_v56, %v1721_v57 }
 0x44e   :  { %v993_v1 = vsel %vm756_vm2, %v968_v60, %v1718_v53  ;;  %v992_v2 = vsel %vm756_vm2, %v967_v61, %v1721_v57 }
 0x44f   :  { %1018 = vst [vmem:[%s2075_s7 + $0x8] sm:$0xff] %v993_v1  ;;  %1017 = vst [vmem:[%s2075_s7] sm:$0xff] %v992_v2  ;;  %v855_v4 = vpop.permute.xlu1 %854  ;;  %v910_v5 = vpop.permute.xlu0 %909 }
 0x450   :  { %v969_v7 = vadd.f32 %v855_v4, %v1724_v58  ;;  %v980_v8 = vadd.f32 %v910_v5, %v1797_v12 }
 0x452   :  { %v994_v53 = vsel %vm756_vm2, %v969_v7, %v1724_v58  ;;  %v1005_v57 = vsel %vm756_vm2, %v980_v8, %v1797_v12 }
 0x453   :  { %1019 = vst [vmem:[%s2075_s7 + $0x10] sm:$0xff] %v994_v53  ;;  %1030 = vst [vmem:[%s2075_s7 + $0x68] sm:$0xff] %v1005_v57  ;;  %v860_v0 = vpop.permute.xlu1 %859  ;;  %v920_v9 = vpop.permute.xlu0 %919 }
 0x454   :  { %v970_v14 = vadd.f32 %v860_v0, %v1737_v63  ;;  %v982_v15 = vadd.f32 %v920_v9, %v1809_v59 }
 0x456   :  { %v995_v58 = vsel %vm756_vm2, %v970_v14, %v1737_v63  ;;  %v1007_v12 = vsel %vm756_vm2, %v982_v15, %v1809_v59 }
 0x457   :  { %1020 = vst [vmem:[%s2075_s7 + $0x18] sm:$0xff] %v995_v58  ;;  %1032 = vst [vmem:[%s2075_s7 + $0x78] sm:$0xff] %v1007_v12  ;;  %v865_v16 = vpop.permute.xlu1 %864  ;;  %v930_v17 = vpop.permute.xlu0 %929 }
 0x458   :  { %v971_v19 = vadd.f32 %v865_v16, %v1740_v3  ;;  %v984_v21 = vadd.f32 %v930_v17, %v1821_v6 }
 0x45a   :  { %v996_v63 = vsel %vm756_vm2, %v971_v19, %v1740_v3  ;;  %v1009_v59 = vsel %vm756_vm2, %v984_v21, %v1821_v6 }
 0x45b   :  { %1021 = vst [vmem:[%s2075_s7 + $0x20] sm:$0xff] %v996_v63  ;;  %1034 = vst [vmem:[%s2075_s7 + $0x88] sm:$0xff] %v1009_v59  ;;  %v870_v24 = vpop.permute.xlu1 %869  ;;  %v940_v25 = vpop.permute.xlu0 %939 }
 0x45c   :  { %v972_v26 = vadd.f32 %v870_v24, %v1749_v10  ;;  %v986_v27 = vadd.f32 %v940_v25, %v1833_v18 }
 0x45e   :  { %v997_v3 = vsel %vm756_vm2, %v972_v26, %v1749_v10  ;;  %v1011_v6 = vsel %vm756_vm2, %v986_v27, %v1833_v18 }
 0x45f   :  { %1022 = vst [vmem:[%s2075_s7 + $0x28] sm:$0xff] %v997_v3  ;;  %1036 = vst [vmem:[%s2075_s7 + $0x98] sm:$0xff] %v1011_v6  ;;  %v875_v29 = vpop.permute.xlu1 %874  ;;  %v950_v31 = vpop.permute.xlu0 %949 }
 0x460   :  { %v973_v34 = vadd.f32 %v875_v29, %v1752_v13  ;;  %v988_v35 = vadd.f32 %v950_v31, %v1845_v32 }
 0x462   :  { %v998_v10 = vsel %vm756_vm2, %v973_v34, %v1752_v13  ;;  %v1013_v18 = vsel %vm756_vm2, %v988_v35, %v1845_v32 }
 0x463   :  { %1023 = vst [vmem:[%s2075_s7 + $0x30] sm:$0xff] %v998_v10  ;;  %1038 = vst [vmem:[%s2075_s7 + $0xa8] sm:$0xff] %v1013_v18  ;;  %v880_v36 = vpop.permute.xlu1 %879  ;;  %v960_v39 = vpop.permute.xlu0 %959 }
 0x464   :  { %v974_v40 = vadd.f32 %v880_v36, %v1761_v20  ;;  %v990_v42 = vadd.f32 %v960_v39, %v1854_v43 }
 0x466   :  { %v999_v13 = vsel %vm756_vm2, %v974_v40, %v1761_v20  ;;  %v1015_v32 = vsel %vm756_vm2, %v990_v42, %v1854_v43 }
 0x467   :  { %1024 = vst [vmem:[%s2075_s7 + $0x38] sm:$0xff] %v999_v13  ;;  %1040 = vst [vmem:[%s2075_s7 + $0xb8] sm:$0xff] %v1015_v32  ;;  %v885_v44 = vpop.permute.xlu1 %884 }
 0x468   :  { %v975_v45 = vadd.f32 %v885_v44, %v1764_v23 }
 0x46a   :  { %v1000_v46 = vsel %vm756_vm2, %v975_v45, %v1764_v23 }
 0x46b   :  { %1025 = vst [vmem:[%s2075_s7 + $0x40] sm:$0xff] %v1000_v46  ;;  %v890_v20 = vpop.permute.xlu1 %889 }
 0x46c   :  { %v976_v43 = vadd.f32 %v890_v20, %v1773_v28 }
 0x46e   :  { %v1001_v55 = vsel %vm756_vm2, %v976_v43, %v1773_v28 }
 0x46f   :  { %1026 = vst [vmem:[%s2075_s7 + $0x48] sm:$0xff] %v1001_v55  ;;  %v895_v30 = vpop.permute.xlu1 %894 }
 0x470   :  { %v977_v48 = vadd.f32 %v895_v30, %v1776_v33 }
 0x472   :  { %v1002_v23 = vsel %vm756_vm2, %v977_v48, %v1776_v33 }
 0x473   :  { %1027 = vst [vmem:[%s2075_s7 + $0x50] sm:$0xff] %v1002_v23  ;;  %v900_v50 = vpop.permute.xlu1 %899 }
 0x474   :  { %v978_v52 = vadd.f32 %v900_v50, %v1785_v38 }
 0x476   :  { %v1003_v28 = vsel %vm756_vm2, %v978_v52, %v1785_v38 }
 0x477   :  { %1028 = vst [vmem:[%s2075_s7 + $0x58] sm:$0xff] %v1003_v28  ;;  %v905_v54 = vpop.permute.xlu1 %904 }
 0x478   :  { %v979_v56 = vadd.f32 %v905_v54, %v1788_v41 }
 0x47a   :  { %v1004_v33 = vsel %vm756_vm2, %v979_v56, %v1788_v41 }
 0x47b   :  { %1029 = vst [vmem:[%s2075_s7 + $0x60] sm:$0xff] %v1004_v33  ;;  %v915_v60 = vpop.permute.xlu1 %914 }
 0x47c   :  { %v981_v61 = vadd.f32 %v915_v60, %v1800_v47 }
 0x47e   :  { %v1006_v38 = vsel %vm756_vm2, %v981_v61, %v1800_v47 }
 0x47f   :  { %1031 = vst [vmem:[%s2075_s7 + $0x70] sm:$0xff] %v1006_v38  ;;  %v925_v1 = vpop.permute.xlu1 %924 }
 0x480   :  { %v983_v2 = vadd.f32 %v925_v1, %v1812_v62 }
 0x482   :  { %v1008_v41 = vsel %vm756_vm2, %v983_v2, %v1812_v62 }
 0x483   :  { %1033 = vst [vmem:[%s2075_s7 + $0x80] sm:$0xff] %v1008_v41  ;;  %v935_v4 = vpop.permute.xlu1 %934 }
 0x484   :  { %v985_v5 = vadd.f32 %v935_v4, %v1824_v11 }
 0x486   :  { %v1010_v47 = vsel %vm756_vm2, %v985_v5, %v1824_v11 }
 0x487   :  { %1035 = vst [vmem:[%s2075_s7 + $0x90] sm:$0xff] %v1010_v47  ;;  %v945_v7 = vpop.permute.xlu1 %944 }
 0x488   :  { %v987_v8 = vadd.f32 %v945_v7, %v1836_v22 }
 0x48a   :  { %v1012_v62 = vsel %vm756_vm2, %v987_v8, %v1836_v22 }
 0x48b   :  { %1037 = vst [vmem:[%s2075_s7 + $0xa0] sm:$0xff] %v1012_v62  ;;  %v955_v53 = vpop.permute.xlu1 %954 }
 0x48c   :  { %v989_v57 = vadd.f32 %v955_v53, %v1848_v37 }
 0x48e   :  { %v1014_v11 = vsel %vm756_vm2, %v989_v57, %v1848_v37 }
 0x48f   :  { %1039 = vst [vmem:[%s2075_s7 + $0xb0] sm:$0xff] %v1014_v11  ;;  %v965_v0 = vpop.permute.xlu1 %964 }
 0x490   :  { %v991_v9 = vadd.f32 %v965_v0, %v1863_v49 }
 0x492   :  { %v1016_v22 = vsel %vm756_vm2, %v991_v9, %v1863_v49 }
 0x493   :  { %1041 = vst [vmem:[%s2075_s7 + $0xc0] sm:$0xff] %v1016_v22 }

</bundles_post_ra>
